<compile_context>
chip_gen: v5e
topology: v5e:2x2
jax: 0.10.0
libtpu: 0.0.40
codegen_flags: <defaults>
</compile_context>

<pallas_src>
import functools

import jax
import jax.numpy as jnp
from jax.experimental import pallas as pl
from jax.experimental.pallas import tpu as pltpu

F1, F2, F3 = 8, 64, 64          # hidden widths of conv_rsr / conv_rtr / conv_rur
BN_EPS = 1e-5
LANE = 128


# ----------------------------- Pallas kernel ------------------------------- #

def _hetero_gat_kernel(x_ref, adj_ref, inv_ref, w1_ref, w2_ref, w3_ref,
                       wlin_ref, vec_ref, o_ref):
    f32, bf16 = jnp.float32, jnp.bfloat16
    x = x_ref[...]                                                  # bf16 (N, Fin)

    # vec slab rows: 0=b1 1=s1 2=t1 3=b2 4=s2 5=t2 6=b3 7=blin'(BN3-folded)

    # ---- layer 1: SAGEConv(Fin -> 8) ---------------------------------------
    # Reassociated as A @ (X @ W_nbr) so the A-matmul runs at width 8; the mean
    # is a per-row f32 inv-degree scale on the f32 accumulator.
    xr = jnp.dot(x, w1_ref[1], preferred_element_type=f32)          # (N, 8)
    agg = jnp.dot(adj_ref[0], xr.astype(bf16),
                  preferred_element_type=f32) * inv_ref[:, 0:1]
    h = (jnp.dot(x, w1_ref[0], preferred_element_type=f32) + agg
         + vec_ref[0:1, :F1])
    h = jnp.maximum(h, 0.0)                                         # ReLU; dropout = id
    h = h * vec_ref[1:2, :F1] + vec_ref[2:3, :F1]                   # folded BN1

    # ---- layer 2: SAGEConv(8 -> 64) -----------------------------------------
    hb = h.astype(bf16)
    agg = jnp.dot(adj_ref[1], hb, preferred_element_type=f32) * inv_ref[:, 1:2]
    h = (jnp.dot(hb, w2_ref[0], preferred_element_type=f32)
         + jnp.dot(agg.astype(bf16), w2_ref[1], preferred_element_type=f32)
         + vec_ref[3:4, :F2])
    h = jnp.maximum(h, 0.0)
    h = h * vec_ref[4:5, :F2] + vec_ref[5:6, :F2]                   # folded BN2

    # ---- layer 3: SAGEConv(64 -> 64); BN3 is folded into the Linear ---------
    hb = h.astype(bf16)
    agg = jnp.dot(adj_ref[2], hb, preferred_element_type=f32) * inv_ref[:, 2:3]
    h = (jnp.dot(hb, w3_ref[0], preferred_element_type=f32)
         + jnp.dot(agg.astype(bf16), w3_ref[1], preferred_element_type=f32)
         + vec_ref[6:7, :F3])
    h = jnp.maximum(h, 0.0)

    # ---- final Linear (with folded BN3), lane-dense 128-wide store ----------
    o_ref[...] = (jnp.dot(h.astype(bf16), wlin_ref[...],
                          preferred_element_type=f32) + vec_ref[7:8, :])


def _fused_call(x_bf16, adj, inv, fp):
    n = x_bf16.shape[0]
    vmem = pl.BlockSpec(memory_space=pltpu.MemorySpace.VMEM)
    return pl.pallas_call(
        _hetero_gat_kernel,
        out_shape=jax.ShapeDtypeStruct((n, LANE), jnp.float32),
        in_specs=[vmem] * 8,
        out_specs=vmem,
    )(x_bf16, adj, inv, fp["w1"], fp["w2"], fp["w3"], fp["wlin"], fp["vec"])


# --------------------- one-time preprocessing (hoisted) --------------------- #

def _adjacency_parts(edge_index, num_nodes):
    """Dense edge-count matrix (exact small ints, bf16) + f32 inv-degree."""
    src, dst = edge_index[0], edge_index[1]
    counts = jnp.zeros((num_nodes, num_nodes), jnp.float32).at[dst, src].add(1.0)
    deg = counts.sum(axis=1, keepdims=True)
    inv = jnp.where(deg > 0, 1.0 / jnp.maximum(deg, 1.0), 0.0)
    return counts.astype(jnp.bfloat16), inv


def pack_graph(edge_index_rsr, edge_index_rtr, edge_index_rur, num_nodes):
    """Run ONCE per graph: stacked bf16 adjacencies + packed f32 inv-degrees."""
    a1, i1 = _adjacency_parts(edge_index_rsr, num_nodes)
    a2, i2 = _adjacency_parts(edge_index_rtr, num_nodes)
    a3, i3 = _adjacency_parts(edge_index_rur, num_nodes)
    adj = jnp.stack([a1, a2, a3], axis=0)                    # (3, N, N) bf16
    inv = jnp.concatenate([i1, i2, i3], axis=1)              # (N, 3)    f32
    return adj, inv


def _bn_fold(p):
    scale = p["gamma"] * jax.lax.rsqrt(p["var"] + BN_EPS)
    shift = p["beta"] - p["mean"] * scale
    return scale, shift


def pack_params(params):
    """Run ONCE per parameter set: fold BN (BN3 into the Linear), stack each
    layer's (W_root, W_nbr) pair, pad the Linear to 128 output lanes, and pack
    all per-feature vectors into a single (8, 128) f32 slab."""
    bf16 = jnp.bfloat16
    p1, p2, p3 = params["conv_rsr"], params["conv_rtr"], params["conv_rur"]
    s1, t1 = _bn_fold(p1)
    s2, t2 = _bn_fold(p2)
    s3, t3 = _bn_fold(p3)

    num_classes = params["lin_w"].shape[1]
    # fold BN3 into the Linear: (h*s3 + t3) @ W + b == h @ (s3^T*W) + (t3@W + b)
    wlin = params["lin_w"] * s3.reshape(-1, 1)               # (64, C) f32
    blin = params["lin_b"] + t3 @ params["lin_w"]            # (1, C)  f32
    wlin_pad = jnp.zeros((F3, LANE), jnp.float32).at[:, :num_classes].set(wlin)

    def _row(v, width):
        return jnp.zeros((1, LANE), jnp.float32).at[:, :width].set(v)

    vec = jnp.concatenate([
        _row(p1["b"], F1), _row(s1, F1), _row(t1, F1),
        _row(p2["b"], F2), _row(s2, F2), _row(t2, F2),
        _row(p3["b"], F3),
        _row(blin, num_classes),
    ], axis=0)                                               # (8, 128) f32

    return {
        "w1": jnp.stack([p1["w_root"], p1["w_nbr"]], 0).astype(bf16),
        "w2": jnp.stack([p2["w_root"], p2["w_nbr"]], 0).astype(bf16),
        "w3": jnp.stack([p3["w_root"], p3["w_nbr"]], 0).astype(bf16),
        "wlin": wlin_pad.astype(bf16),
        "vec": vec,
    }


# ------------------------------- forward ----------------------------------- #

@functools.partial(jax.jit, static_argnames=("num_classes",))
def hetero_gat_forward(packed, x, adj, inv, *, num_classes):
    out_padded = _fused_call(x.astype(jnp.bfloat16), adj, inv, packed)
    return out_padded[:, :num_classes]


# ---------------------------- parameter init -------------------------------- #

def init_sage_bn_params(key, f_in, f_out):
    k1, k2 = jax.random.split(key)
    scale = 1.0 / jnp.sqrt(jnp.float32(f_in))
    return {
        "w_root": jax.random.normal(k1, (f_in, f_out), jnp.float32) * scale,
        "w_nbr": jax.random.normal(k2, (f_in, f_out), jnp.float32) * scale,
        "b": jnp.zeros((1, f_out), jnp.float32),
        # BatchNorm1d default init (inference statistics)
        "gamma": jnp.ones((1, f_out), jnp.float32),
        "beta": jnp.zeros((1, f_out), jnp.float32),
        "mean": jnp.zeros((1, f_out), jnp.float32),
        "var": jnp.ones((1, f_out), jnp.float32),
    }


def init_params(num_features, num_classes, seed=0):
    keys = jax.random.split(jax.random.PRNGKey(seed), 4)
    return {
        "conv_rsr": init_sage_bn_params(keys[0], num_features, F1),
        "conv_rtr": init_sage_bn_params(keys[1], F1, F2),
        "conv_rur": init_sage_bn_params(keys[2], F2, F3),
        "lin_w": jax.random.normal(keys[3], (F3, num_classes), jnp.float32)
                 * (1.0 / jnp.sqrt(float(F3))),
        "lin_b": jnp.zeros((1, num_classes), jnp.float32),
    }


# --------------------------------- main ------------------------------------ #

if __name__ == "__main__":
    NUM_NODES = 64
    NUM_FEATURES = 16
    NUM_CLASSES = 4
    NUM_EDGES = 128

    key = jax.random.PRNGKey(0)
    kx, ke1, ke2, ke3 = jax.random.split(key, 4)

    x = jax.random.normal(kx, (NUM_NODES, NUM_FEATURES), jnp.float32)
    edge_index_rsr = jax.random.randint(ke1, (2, NUM_EDGES), 0, NUM_NODES)
    edge_index_rtr = jax.random.randint(ke2, (2, NUM_EDGES), 0, NUM_NODES)
    edge_index_rur = jax.random.randint(ke3, (2, NUM_EDGES), 0, NUM_NODES)

    params = init_params(NUM_FEATURES, NUM_CLASSES, seed=0)

    # One-time preprocessing, hoisted out of the per-call forward path.
    adj, inv = pack_graph(edge_index_rsr, edge_index_rtr, edge_index_rur,
                          NUM_NODES)
    packed = pack_params(params)
    adj, inv, packed = jax.block_until_ready((adj, inv, packed))

    out = hetero_gat_forward(packed, x, adj, inv, num_classes=NUM_CLASSES)
    out = jax.block_until_ready(out)
    assert out.shape == (NUM_NODES, NUM_CLASSES)
    assert jnp.all(jnp.isfinite(out))
    print("KERNEL_OK")
</pallas_src>

<mosaic_0001>
module attributes {stable_mosaic.version = 11 : i64} {
  func.func @_hetero_gat_kernel(%arg0: memref<64x16xbf16, #tpu.memory_space<vmem>>, %arg1: memref<3x64x64xbf16, #tpu.memory_space<vmem>>, %arg2: memref<64x3xf32, #tpu.memory_space<vmem>>, %arg3: memref<2x16x8xbf16, #tpu.memory_space<vmem>>, %arg4: memref<2x8x64xbf16, #tpu.memory_space<vmem>>, %arg5: memref<2x64x64xbf16, #tpu.memory_space<vmem>>, %arg6: memref<64x128xbf16, #tpu.memory_space<vmem>>, %arg7: memref<8x128xf32, #tpu.memory_space<vmem>>, %arg8: memref<64x128xf32, #tpu.memory_space<vmem>>) attributes {dimension_semantics = [], scalar_prefetch = 0 : i64, scratch_operands = 0 : i64, tpu.core_type = #tpu.core_type<tc>} {
    %c0 = arith.constant 0 : index
    %c0_0 = arith.constant 0 : index
    %0 = vector.load %arg0[%c0, %c0_0] : memref<64x16xbf16, #tpu.memory_space<vmem>>, vector<64x16xbf16>
    %c1 = arith.constant 1 : index
    %c0_1 = arith.constant 0 : index
    %c0_2 = arith.constant 0 : index
    %1 = vector.load %arg3[%c1, %c0_1, %c0_2] : memref<2x16x8xbf16, #tpu.memory_space<vmem>>, vector<1x16x8xbf16>
    %2 = vector.shape_cast %1 : vector<1x16x8xbf16> to vector<16x8xbf16>
    %cst = arith.constant dense<0.000000e+00> : vector<64x8xf32>
    %3 = tpu.matmul %0, %2, %cst {dimension_numbers = #tpu.dot_dimension_numbers<[1], [0], [0], [1], [0, 0, 1, 1], [], []>} : vector<64x16xbf16>, vector<16x8xbf16>, vector<64x8xf32> -> vector<64x8xf32>
    %c0_3 = arith.constant 0 : index
    %c0_4 = arith.constant 0 : index
    %c0_5 = arith.constant 0 : index
    %4 = vector.load %arg1[%c0_3, %c0_4, %c0_5] : memref<3x64x64xbf16, #tpu.memory_space<vmem>>, vector<1x64x64xbf16>
    %5 = vector.shape_cast %4 : vector<1x64x64xbf16> to vector<64x64xbf16>
    %6 = arith.truncf %3 : vector<64x8xf32> to vector<64x8xbf16>
    %cst_6 = arith.constant dense<0.000000e+00> : vector<64x8xf32>
    %7 = tpu.matmul %5, %6, %cst_6 {dimension_numbers = #tpu.dot_dimension_numbers<[1], [0], [0], [1], [0, 0, 1, 1], [], []>} : vector<64x64xbf16>, vector<64x8xbf16>, vector<64x8xf32> -> vector<64x8xf32>
    %c0_7 = arith.constant 0 : index
    %c0_8 = arith.constant 0 : index
    %8 = vector.load %arg2[%c0_7, %c0_8] : memref<64x3xf32, #tpu.memory_space<vmem>>, vector<64x1xf32>
    %9 = vector.broadcast %8 : vector<64x1xf32> to vector<64x8xf32>
    %10 = arith.mulf %7, %9 : vector<64x8xf32>
    %c0_9 = arith.constant 0 : index
    %c0_10 = arith.constant 0 : index
    %c0_11 = arith.constant 0 : index
    %11 = vector.load %arg3[%c0_9, %c0_10, %c0_11] : memref<2x16x8xbf16, #tpu.memory_space<vmem>>, vector<1x16x8xbf16>
    %12 = vector.shape_cast %11 : vector<1x16x8xbf16> to vector<16x8xbf16>
    %cst_12 = arith.constant dense<0.000000e+00> : vector<64x8xf32>
    %13 = tpu.matmul %0, %12, %cst_12 {dimension_numbers = #tpu.dot_dimension_numbers<[1], [0], [0], [1], [0, 0, 1, 1], [], []>} : vector<64x16xbf16>, vector<16x8xbf16>, vector<64x8xf32> -> vector<64x8xf32>
    %14 = arith.addf %13, %10 : vector<64x8xf32>
    %c0_13 = arith.constant 0 : index
    %c0_14 = arith.constant 0 : index
    %15 = vector.load %arg7[%c0_13, %c0_14] : memref<8x128xf32, #tpu.memory_space<vmem>>, vector<1x8xf32>
    %16 = vector.broadcast %15 : vector<1x8xf32> to vector<64x8xf32>
    %17 = arith.addf %14, %16 : vector<64x8xf32>
    %cst_15 = arith.constant 0.000000e+00 : f32
    %18 = vector.broadcast %cst_15 : f32 to vector<64x8xf32>
    %19 = arith.maximumf %17, %18 : vector<64x8xf32>
    %c1_16 = arith.constant 1 : index
    %c0_17 = arith.constant 0 : index
    %20 = vector.load %arg7[%c1_16, %c0_17] : memref<8x128xf32, #tpu.memory_space<vmem>>, vector<1x8xf32>
    %21 = vector.broadcast %20 : vector<1x8xf32> to vector<64x8xf32>
    %22 = arith.mulf %19, %21 : vector<64x8xf32>
    %c2 = arith.constant 2 : index
    %c0_18 = arith.constant 0 : index
    %23 = vector.load %arg7[%c2, %c0_18] : memref<8x128xf32, #tpu.memory_space<vmem>>, vector<1x8xf32>
    %24 = vector.broadcast %23 : vector<1x8xf32> to vector<64x8xf32>
    %25 = arith.addf %22, %24 : vector<64x8xf32>
    %26 = arith.truncf %25 : vector<64x8xf32> to vector<64x8xbf16>
    %c1_19 = arith.constant 1 : index
    %c0_20 = arith.constant 0 : index
    %c0_21 = arith.constant 0 : index
    %27 = vector.load %arg1[%c1_19, %c0_20, %c0_21] : memref<3x64x64xbf16, #tpu.memory_space<vmem>>, vector<1x64x64xbf16>
    %28 = vector.shape_cast %27 : vector<1x64x64xbf16> to vector<64x64xbf16>
    %cst_22 = arith.constant dense<0.000000e+00> : vector<64x8xf32>
    %29 = tpu.matmul %28, %26, %cst_22 {dimension_numbers = #tpu.dot_dimension_numbers<[1], [0], [0], [1], [0, 0, 1, 1], [], []>} : vector<64x64xbf16>, vector<64x8xbf16>, vector<64x8xf32> -> vector<64x8xf32>
    %c0_23 = arith.constant 0 : index
    %c1_24 = arith.constant 1 : index
    %30 = vector.load %arg2[%c0_23, %c1_24] : memref<64x3xf32, #tpu.memory_space<vmem>>, vector<64x1xf32>
    %31 = vector.broadcast %30 : vector<64x1xf32> to vector<64x8xf32>
    %32 = arith.mulf %29, %31 : vector<64x8xf32>
    %c0_25 = arith.constant 0 : index
    %c0_26 = arith.constant 0 : index
    %c0_27 = arith.constant 0 : index
    %33 = vector.load %arg4[%c0_25, %c0_26, %c0_27] : memref<2x8x64xbf16, #tpu.memory_space<vmem>>, vector<1x8x64xbf16>
    %34 = vector.shape_cast %33 : vector<1x8x64xbf16> to vector<8x64xbf16>
    %cst_28 = arith.constant dense<0.000000e+00> : vector<64x64xf32>
    %35 = tpu.matmul %26, %34, %cst_28 {dimension_numbers = #tpu.dot_dimension_numbers<[1], [0], [0], [1], [0, 0, 1, 1], [], []>} : vector<64x8xbf16>, vector<8x64xbf16>, vector<64x64xf32> -> vector<64x64xf32>
    %36 = arith.truncf %32 : vector<64x8xf32> to vector<64x8xbf16>
    %c1_29 = arith.constant 1 : index
    %c0_30 = arith.constant 0 : index
    %c0_31 = arith.constant 0 : index
    %37 = vector.load %arg4[%c1_29, %c0_30, %c0_31] : memref<2x8x64xbf16, #tpu.memory_space<vmem>>, vector<1x8x64xbf16>
    %38 = vector.shape_cast %37 : vector<1x8x64xbf16> to vector<8x64xbf16>
    %cst_32 = arith.constant dense<0.000000e+00> : vector<64x64xf32>
    %39 = tpu.matmul %36, %38, %cst_32 {dimension_numbers = #tpu.dot_dimension_numbers<[1], [0], [0], [1], [0, 0, 1, 1], [], []>} : vector<64x8xbf16>, vector<8x64xbf16>, vector<64x64xf32> -> vector<64x64xf32>
    %40 = arith.addf %35, %39 : vector<64x64xf32>
    %c3 = arith.constant 3 : index
    %c0_33 = arith.constant 0 : index
    %41 = vector.load %arg7[%c3, %c0_33] : memref<8x128xf32, #tpu.memory_space<vmem>>, vector<1x64xf32>
    %42 = vector.broadcast %41 : vector<1x64xf32> to vector<64x64xf32>
    %43 = arith.addf %40, %42 : vector<64x64xf32>
    %cst_34 = arith.constant 0.000000e+00 : f32
    %44 = vector.broadcast %cst_34 : f32 to vector<64x64xf32>
    %45 = arith.maximumf %43, %44 : vector<64x64xf32>
    %c4 = arith.constant 4 : index
    %c0_35 = arith.constant 0 : index
    %46 = vector.load %arg7[%c4, %c0_35] : memref<8x128xf32, #tpu.memory_space<vmem>>, vector<1x64xf32>
    %47 = vector.broadcast %46 : vector<1x64xf32> to vector<64x64xf32>
    %48 = arith.mulf %45, %47 : vector<64x64xf32>
    %c5 = arith.constant 5 : index
    %c0_36 = arith.constant 0 : index
    %49 = vector.load %arg7[%c5, %c0_36] : memref<8x128xf32, #tpu.memory_space<vmem>>, vector<1x64xf32>
    %50 = vector.broadcast %49 : vector<1x64xf32> to vector<64x64xf32>
    %51 = arith.addf %48, %50 : vector<64x64xf32>
    %52 = arith.truncf %51 : vector<64x64xf32> to vector<64x64xbf16>
    %c2_37 = arith.constant 2 : index
    %c0_38 = arith.constant 0 : index
    %c0_39 = arith.constant 0 : index
    %53 = vector.load %arg1[%c2_37, %c0_38, %c0_39] : memref<3x64x64xbf16, #tpu.memory_space<vmem>>, vector<1x64x64xbf16>
    %54 = vector.shape_cast %53 : vector<1x64x64xbf16> to vector<64x64xbf16>
    %cst_40 = arith.constant dense<0.000000e+00> : vector<64x64xf32>
    %55 = tpu.matmul %54, %52, %cst_40 {dimension_numbers = #tpu.dot_dimension_numbers<[1], [0], [0], [1], [0, 0, 1, 1], [], []>} : vector<64x64xbf16>, vector<64x64xbf16>, vector<64x64xf32> -> vector<64x64xf32>
    %c0_41 = arith.constant 0 : index
    %c2_42 = arith.constant 2 : index
    %56 = vector.load %arg2[%c0_41, %c2_42] : memref<64x3xf32, #tpu.memory_space<vmem>>, vector<64x1xf32>
    %57 = vector.broadcast %56 : vector<64x1xf32> to vector<64x64xf32>
    %58 = arith.mulf %55, %57 : vector<64x64xf32>
    %c0_43 = arith.constant 0 : index
    %c0_44 = arith.constant 0 : index
    %c0_45 = arith.constant 0 : index
    %59 = vector.load %arg5[%c0_43, %c0_44, %c0_45] : memref<2x64x64xbf16, #tpu.memory_space<vmem>>, vector<1x64x64xbf16>
    %60 = vector.shape_cast %59 : vector<1x64x64xbf16> to vector<64x64xbf16>
    %cst_46 = arith.constant dense<0.000000e+00> : vector<64x64xf32>
    %61 = tpu.matmul %52, %60, %cst_46 {dimension_numbers = #tpu.dot_dimension_numbers<[1], [0], [0], [1], [0, 0, 1, 1], [], []>} : vector<64x64xbf16>, vector<64x64xbf16>, vector<64x64xf32> -> vector<64x64xf32>
    %62 = arith.truncf %58 : vector<64x64xf32> to vector<64x64xbf16>
    %c1_47 = arith.constant 1 : index
    %c0_48 = arith.constant 0 : index
    %c0_49 = arith.constant 0 : index
    %63 = vector.load %arg5[%c1_47, %c0_48, %c0_49] : memref<2x64x64xbf16, #tpu.memory_space<vmem>>, vector<1x64x64xbf16>
    %64 = vector.shape_cast %63 : vector<1x64x64xbf16> to vector<64x64xbf16>
    %cst_50 = arith.constant dense<0.000000e+00> : vector<64x64xf32>
    %65 = tpu.matmul %62, %64, %cst_50 {dimension_numbers = #tpu.dot_dimension_numbers<[1], [0], [0], [1], [0, 0, 1, 1], [], []>} : vector<64x64xbf16>, vector<64x64xbf16>, vector<64x64xf32> -> vector<64x64xf32>
    %66 = arith.addf %61, %65 : vector<64x64xf32>
    %c6 = arith.constant 6 : index
    %c0_51 = arith.constant 0 : index
    %67 = vector.load %arg7[%c6, %c0_51] : memref<8x128xf32, #tpu.memory_space<vmem>>, vector<1x64xf32>
    %68 = vector.broadcast %67 : vector<1x64xf32> to vector<64x64xf32>
    %69 = arith.addf %66, %68 : vector<64x64xf32>
    %cst_52 = arith.constant 0.000000e+00 : f32
    %70 = vector.broadcast %cst_52 : f32 to vector<64x64xf32>
    %71 = arith.maximumf %69, %70 : vector<64x64xf32>
    %72 = arith.truncf %71 : vector<64x64xf32> to vector<64x64xbf16>
    %c0_53 = arith.constant 0 : index
    %c0_54 = arith.constant 0 : index
    %73 = vector.load %arg6[%c0_53, %c0_54] : memref<64x128xbf16, #tpu.memory_space<vmem>>, vector<64x128xbf16>
    %cst_55 = arith.constant dense<0.000000e+00> : vector<64x128xf32>
    %74 = tpu.matmul %72, %73, %cst_55 {dimension_numbers = #tpu.dot_dimension_numbers<[1], [0], [0], [1], [0, 0, 1, 1], [], []>} : vector<64x64xbf16>, vector<64x128xbf16>, vector<64x128xf32> -> vector<64x128xf32>
    %c7 = arith.constant 7 : index
    %c0_56 = arith.constant 0 : index
    %75 = vector.load %arg7[%c7, %c0_56] : memref<8x128xf32, #tpu.memory_space<vmem>>, vector<1x128xf32>
    %76 = vector.broadcast %75 : vector<1x128xf32> to vector<64x128xf32>
    %77 = arith.addf %74, %76 : vector<64x128xf32>
    %c0_57 = arith.constant 0 : index
    %c0_58 = arith.constant 0 : index
    %78 = vector.load %arg8[%c0_57, %c0_58] : memref<64x128xf32, #tpu.memory_space<vmem>>, vector<64x128xf32>
    tpu.vector_store %arg8[%c0_57, %c0_58], %77 {strides = array<i32>} : memref<64x128xf32, #tpu.memory_space<vmem>>, vector<64x128xf32>,
    return
  }
}

</mosaic_0001>

<bundles_post_ra>
// kernel: hetero_gat_forward.1
= control target key start
LH: loop header
LB: loop body
LE: loop exit
PB: predicated region body
PF: predicated region fallthrough
CT: control target
= control target key end

     0   :  { %13 = vsyncpa [#allocation3], 0  ;;  %s1214_s30 = smov [#allocation2]   ;;  %s1215_s10 = smov 64   ;;  %s1534_s0 = inlined_call_operand.vmem [shape: bf16[64,16], index: 0, kind: input, shape index: {}]   ;;  %s1535_s1 = inlined_call_operand.vmem [shape: bf16[3,64,64], index: 1, kind: input, shape index: {}]   ;;  %s1536_s2 = inlined_call_operand.vmem [shape: f32[64,3], index: 2, kind: input, shape index: {}]   ;;  %s1537_s3 = inlined_call_operand.vmem [shape: bf16[2,16,8], index: 3, kind: input, shape index: {}]   ;;  %s1538_s4 = inlined_call_operand.vmem [shape: bf16[2,8,64], index: 4, kind: input, shape index: {}]   ;;  %s1539_s5 = inlined_call_operand.hbm [shape: bf16[2,64,64], index: 5, kind: input, shape index: {}]   ;;  %s1540_s6 = inlined_call_operand.vmem [shape: bf16[64,128], index: 6, kind: input, shape index: {}]   ;;  %s1541_s7 = inlined_call_operand.vmem [shape: f32[8,128], index: 7, kind: input, shape index: {}]   ;;  %s1542_s8 = inlined_call_operand.vmem [shape: f32[64,128], index: 8, kind: output, shape index: {}]  }
   0x1   :  { %s28_s29 = sshll.u32 %s1539_s5, 4  ;;  %s30_s9 = sshll.u32 %s1214_s30, 4  ;;  %s29_s29 = int_to_ptr.hbm [resolvable:$true] %s28_s29  ;;  %s31_s9 = int_to_ptr.vmem [resolvable:$true] %s30_s9 }
   0x2   :  { %s1216_s11 = smov 4  }
   0x3   :  { %36 = dma.hbm_to_vmem [thread:$0]  %s29_s29, 1024, %s31_s9, [#allocation3], %s1215_s10, %s1215_s10, %s1216_s11  }
   0x4   :  { %1212 = dma.done.wait [#allocation3], 1024  }
   0x5   :  { %1213 = vsyncadd [#allocation3], 4294966272  ;;  %v1137_v0 = vld [vmem:[%s1537_s3 + $0x8] sm:$0xff]  ;;  %v1133_v1 = vld [vmem:[%s1534_s0] sm:$0xff]  ;;  %vm83_vm0 = vcmask 130048   ;;  %v1217_v9 = vmov 0  }
   0x6   :  { %v1135_v2 = vld [vmem:[%s1534_s0 + $0x10] sm:$0xff]  ;;  %103 = vmatpush.bf16.msra.mxu0 %v1137_v0  ;;  %1163 = vmatpush.bf16.msra.mxu1 %v1137_v0  ;;  %v1134_v3 = vld [vmem:[%s1534_s0 + $0x8] sm:$0xff]  ;;  %v1136_v4 = vld [vmem:[%s1534_s0 + $0x18] sm:$0xff]  ;;  %vm157_vm1 = vcmask 523264   ;;  %vm464_vm2 = vcmask 1043456   ;;  %vm451_vm3 = vcmask 64512  }
   0x7   :  { %v1142_v7 = vld [vmem:[%s1537_s3] sm:$0xff]  ;;  %v1293_v8 = vld [vmem:[%s1536_s2 + $0x30] sm:$0xff]  ;;  %1171 = vset.pattern.permute.xlu0 %v1217_v9  ;;  %1172 = vset.pattern.permute.xlu1 %v1217_v9  ;;  %v1301_v12 = vld [vmem:[%s1536_s2 + $0x38] sm:$0xff] }
   0x8   :  { %270 = vmatpush.bf16.msra.mxu2 %v1142_v7  ;;  %1164 = vmatpush.bf16.msra.mxu3 %v1142_v7  ;;  %v1306_v13 = vld [vmem:[%s1536_s2 + $0x20] sm:$0xff]  ;;  %v1313_v15 = vld [vmem:[%s1536_s2 + $0x28] sm:$0xff]  ;;  %v1341_v27 = vld [vmem:[%s1536_s2 + $0x10] sm:$0xff] }
   0x9   :  { %976 = vmatmul.msk.bf16.vlgmr.msra.gmra.mxu0 %vm83_vm0, %v1133_v1  ;;  %978 = vmatmul.msk.bf16.vlgmr.msra.gmra.mxu1 %vm83_vm0, %v1135_v2  ;;  %v1318_v16 = vld [vmem:[%s1536_s2] sm:$0xff]  ;;  %v1327_v20 = vld [vmem:[%s1536_s2 + $0x8] sm:$0xff]  ;;  %v1347_v28 = vld [vmem:[%s1536_s2 + $0x18] sm:$0xff] }
   0xa   :  { %239 = vperm.xlu0 %1171, %v1293_v8   ;;  %1173 = vset.pattern.permute.xlu2 %v1217_v9  ;;  %v1138_v25 = vld [vmem:[%s1535_s1] sm:$0xff]  ;;  %v1139_v26 = vld [vmem:[%s1535_s1 + $0x8] sm:$0xff]  ;;  %v1140_v29 = vld [vmem:[%s1535_s1 + $0x10] sm:$0xff] }
   0xb   :  { %1004 = vmatmul.msk.bf16.vlgmr.msra.gmra.mxu2 %vm83_vm0, %v1133_v1  ;;  %1006 = vmatmul.msk.bf16.vlgmr.msra.gmra.mxu3 %vm83_vm0, %v1135_v2  ;;  %v1141_v30 = vld [vmem:[%s1535_s1 + $0x18] sm:$0xff]  ;;  %v444_v33 = vld [vmem:[%s1538_s4] sm:$0xf] }
   0xc   :  { %229 = vperm.xlu1 %1172, %v1306_v13   ;;  %219 = vperm.xlu2 %1173, %v1341_v27   ;;  %v510_v34 = vsel %vm464_vm2, %v444_v33, 0  ;;  %v1369_v42 = vld [vmem:[%s1541_s7] ss:$0 sm:$0xff]  ;;  %v1375_v49 = vld [vmem:[%s1541_s7 + $0x1] ss:$0 sm:$0xff] }
   0xd   :  { %519 = vmatpush.bf16.msrb.mxu2 %v510_v34  ;;  %v1382_v55 = vld [vmem:[%s1541_s7 + $0x2] ss:$0 sm:$0xff] }
  0x12   :  { %244 = vperm.xlu0 %1171, %v1301_v12  }
  0x14   :  { %234 = vperm.xlu1 %1172, %v1313_v15   ;;  %224 = vperm.xlu2 %1173, %v1347_v28  }
  0x19   :  { %977 = vmatmul.msk.bf16.gmra.mxu0 %vm83_vm0, %v1134_v3  ;;  %979 = vmatmul.msk.bf16.gmra.mxu1 %vm83_vm0, %v1136_v4 }
  0x1a   :  { %209 = vperm.xlu0 %1171, %v1318_v16  }
  0x1b   :  { %1005 = vmatmul.msk.bf16.gmra.mxu2 %vm83_vm0, %v1134_v3  ;;  %1007 = vmatmul.msk.bf16.gmra.mxu3 %vm83_vm0, %v1136_v4 }
  0x1c   :  { %214 = vperm.xlu1 %1172, %v1327_v20  }
  0x66   :  { %v220_v51 = vpop.permute.xlu2 %219 }
  0x6e   :  { %v225_v0 = vpop.permute.xlu2 %224 }
  0x7c   :  { %v1358_v31 = vpop.permute.xlu0 %239 }
  0x7e   :  { %v230_v32 = vpop.permute.xlu1 %229 }
  0x84   :  { %v1364_v35 = vpop.permute.xlu0 %244 }
  0x86   :  { %v105_v5 = vpop.f32.mrf.mxu0  ;;  %v115_v6 = vpop.f32.mrf.mxu1 }
  0x87   :  { %v235_v37 = vpop.permute.xlu1 %234 }
  0x8c   :  { %v210_v38 = vpop.permute.xlu0 %209 }
  0x8e   :  { %v117_v10 = vpop.f32.mrf.mxu1  ;;  %v107_v11 = vpop.f32.mrf.mxu0 }
  0x8f   :  { %v135_v21 = vpack.c.bf16 %v117_v10, %v115_v6  ;;  %v133_v24 = vpack.c.bf16 %v107_v11, %v105_v5  ;;  %v272_v36 = vpop.f32.mrf.mxu2  ;;  %v215_v44 = vpop.permute.xlu1 %214 }
  0x90   :  { %v282_v7 = vpop.f32.mrf.mxu3 }
  0x96   :  { %v120_v14 = vpop.f32.mrf.mxu1  ;;  %v110_v17 = vpop.f32.mrf.mxu0 }
  0x97   :  { %v274_v43 = vpop.f32.mrf.mxu2 }
  0x9e   :  { %v122_v18 = vpop.f32.mrf.mxu1  ;;  %v112_v22 = vpop.f32.mrf.mxu0 }
  0x9f   :  { %v136_v19 = vpack.c.bf16 %v122_v18, %v120_v14  ;;  %v134_v23 = vpack.c.bf16 %v112_v22, %v110_v17  ;;  %v277_v53 = vpop.f32.mrf.mxu2 }
  0xa1   :  { %174 = vmatpush.bf16.msrb.mxu1 %v136_v19 }
  0xa5   :  { %175 = vmatpush.bf16.msrb.mxu1 %v135_v21 }
  0xa7   :  { %v279_v3 = vpop.f32.mrf.mxu2 }
  0xa9   :  { %176 = vmatpush.bf16.msrb.mxu1 %v134_v23 }
  0xad   :  { %177 = vmatpush.bf16.msrb.mxu1 %v133_v24  ;;  %v284_v24 = vpop.f32.mrf.mxu3 }
  0xb0   :  { %996 = vmatmul.msk.bf16.vlgmr.msrb.gmra.mxu1 %vm157_vm1, %v1138_v25 }
  0xc0   :  { %997 = vmatmul.msk.bf16.gmra.mxu1 %vm157_vm1, %v1139_v26 }
  0xd0   :  { %998 = vmatmul.msk.bf16.gmra.mxu1 %vm157_vm1, %v1140_v29 }
  0xe0   :  { %999 = vmatmul.msk.bf16.gmra.mxu1 %vm157_vm1, %v1141_v30 }
 0x12d   :  { %v179_v39 = vpop.f32.mrf.mxu1 }
 0x12e   :  { %v247_v40 = vmul.f32 %v210_v38, %v179_v39  ;;  %v287_v38 = vpop.f32.mrf.mxu3 }
 0x130   :  { %v273_v41 = vadd.f32 %v272_v36, %v247_v40 }
 0x132   :  { %v294_v45 = vadd.f32 %v1369_v42, %v273_v41 }
 0x134   :  { %v302_v48 = vmax.f32 %v294_v45, 0.0 }
 0x135   :  { %v181_v46 = vpop.f32.mrf.mxu1 }
 0x136   :  { %v248_v47 = vmul.f32 %v215_v44, %v181_v46  ;;  %v312_v54 = vmul.f32 %v1375_v49, %v302_v48 }
 0x138   :  { %v275_v50 = vadd.f32 %v274_v43, %v248_v47  ;;  %v322_v60 = vadd.f32 %v1382_v55, %v312_v54  ;;  %v1218_v47 = vmov 1  }
 0x139   :  { %1175 = vset.pattern.permute.xlu0 %v1218_v47  ;;  %1176 = vset.pattern.permute.xlu1 %v1218_v47 }
 0x13a   :  { %v295_v52 = vadd.f32 %v1369_v42, %v275_v50  ;;  %409 = vperm.xlu0 %1175, %v1327_v20   ;;  %413 = vperm.xlu1 %1176, %v1341_v27  }
 0x13b   :  { %1174 = vset.pattern.permute.xlu2 %v1218_v47 }
 0x13c   :  { %v303_v56 = vmax.f32 %v295_v52, 0.0  ;;  %405 = vperm.xlu2 %1174, %v1318_v16  }
 0x13d   :  { %v184_v57 = vpop.f32.mrf.mxu1 }
 0x13e   :  { %v313_v58 = vmul.f32 %v1375_v49, %v303_v56  ;;  %v249_v59 = vmul.f32 %v220_v51, %v184_v57 }
 0x140   :  { %v323_v61 = vadd.f32 %v1382_v55, %v313_v58  ;;  %v278_v62 = vadd.f32 %v277_v53, %v249_v59 }
 0x142   :  { %v1387_v63 = vpack.c.bf16 %v323_v61, %v322_v60  ;;  %v296_v1 = vadd.f32 %v1369_v42, %v278_v62  ;;  %429 = vperm.xlu0 %1175, %v1293_v8   ;;  %421 = vperm.xlu1 %1176, %v1306_v13   ;;  %v1146_v60 = vld [vmem:[%s1535_s1 + $0x38] sm:$0xff]  ;;  %v1036_v61 = vld [vmem:[%s1538_s4 + $0x4] sm:$0xf] }
 0x143   :  { %v466_v62 = vsel %vm464_vm2, %v1036_v61, 0 }
 0x144   :  { %1041 = vmatmul.msk.bf16.vlgmr.msrb.gmra.mxu2 %vm451_vm3, %v1387_v63  ;;  %v304_v5 = vmax.f32 %v296_v1, 0.0  ;;  %417 = vperm.xlu2 %1174, %v1347_v28  }
 0x145   :  { %v186_v2 = vpop.f32.mrf.mxu1  ;;  %475 = vmatpush.bf16.msrb.mxu0 %v466_v62 }
 0x146   :  { %v250_v4 = vmul.f32 %v225_v0, %v186_v2  ;;  %v314_v10 = vmul.f32 %v1375_v49, %v304_v5 }
 0x148   :  { %v280_v6 = vadd.f32 %v279_v3, %v250_v4  ;;  %v324_v21 = vadd.f32 %v1382_v55, %v314_v10 }
 0x14a   :  { %v297_v9 = vadd.f32 %v1369_v42, %v280_v6  ;;  %433 = vperm.xlu1 %1176, %v1301_v12  }
 0x14c   :  { %v305_v11 = vmax.f32 %v297_v9, 0.0  ;;  %425 = vperm.xlu2 %1174, %v1313_v15  }
 0x14d   :  { %v189_v14 = vpop.f32.mrf.mxu1 }
 0x14e   :  { %v315_v17 = vmul.f32 %v1375_v49, %v305_v11  ;;  %v251_v18 = vmul.f32 %v230_v32, %v189_v14 }
 0x150   :  { %v283_v19 = vadd.f32 %v282_v7, %v251_v18  ;;  %v325_v22 = vadd.f32 %v1382_v55, %v315_v17 }
 0x152   :  { %v331_v23 = vpack.c.bf16 %v325_v22, %v324_v21  ;;  %v298_v25 = vadd.f32 %v1369_v42, %v283_v19 }
 0x154   :  { %1042 = vmatmul.msk.bf16.gmra.mxu2 %vm451_vm3, %v331_v23  ;;  %v306_v30 = vmax.f32 %v298_v25, 0.0 }
 0x155   :  { %v191_v26 = vpop.f32.mrf.mxu1 }
 0x156   :  { %v252_v29 = vmul.f32 %v235_v37, %v191_v26  ;;  %v316_v36 = vmul.f32 %v1375_v49, %v306_v30 }
 0x158   :  { %v285_v33 = vadd.f32 %v284_v24, %v252_v29  ;;  %v326_v44 = vadd.f32 %v1382_v55, %v316_v36 }
 0x15a   :  { %v299_v34 = vadd.f32 %v1369_v42, %v285_v33 }
 0x15c   :  { %v307_v32 = vmax.f32 %v299_v34, 0.0 }
 0x15d   :  { %v194_v39 = vpop.f32.mrf.mxu1 }
 0x15e   :  { %v317_v40 = vmul.f32 %v1375_v49, %v307_v32  ;;  %v253_v41 = vmul.f32 %v1358_v31, %v194_v39  ;;  %v289_v31 = vpop.f32.mrf.mxu3  ;;  %v1153_v39 = vld [vmem:[#allocation2 + $0x10] sm:$0xff] }
 0x160   :  { %v288_v43 = vadd.f32 %v287_v38, %v253_v41  ;;  %v327_v45 = vadd.f32 %v1382_v55, %v317_v40  ;;  %v1154_v38 = vld [vmem:[#allocation2 + $0x18] sm:$0xff]  ;;  %v1152_v40 = vld [vmem:[#allocation2 + $0x8] sm:$0xff]  ;;  %v1151_v41 = vld [vmem:[#allocation2] sm:$0xff] }
 0x161   :  { %819 = vmatpush.bf16.msra.mxu0 %v1154_v38 }
 0x162   :  { %v332_v46 = vpack.c.bf16 %v327_v45, %v326_v44  ;;  %v300_v37 = vadd.f32 %v1369_v42, %v288_v43 }
 0x164   :  { %1043 = vmatmul.msk.bf16.gmra.mxu2 %vm451_vm3, %v332_v46  ;;  %v308_v51 = vmax.f32 %v300_v37, 0.0  ;;  %v1183_v37 = vld [vmem:[%s1541_s7 + $0x3] ss:$0 sm:$0xff] }
 0x165   :  { %v196_v48 = vpop.f32.mrf.mxu1  ;;  %820 = vmatpush.bf16.msra.mxu0 %v1153_v39 }
 0x166   :  { %v254_v50 = vmul.f32 %v1364_v35, %v196_v48  ;;  %v318_v56 = vmul.f32 %v1375_v49, %v308_v51  ;;  %v1184_v51 = vld [vmem:[%s1541_s7 + $0x4] ss:$0 sm:$0xff] }
 0x168   :  { %v290_v52 = vadd.f32 %v289_v31, %v254_v50  ;;  %v328_v35 = vadd.f32 %v1382_v55, %v318_v56  ;;  %v1185_v56 = vld [vmem:[%s1541_s7 + $0x5] ss:$0 sm:$0xff] }
 0x169   :  { %821 = vmatpush.bf16.msra.mxu0 %v1152_v40 }
 0x16a   :  { %v301_v53 = vadd.f32 %v1369_v42, %v290_v52  ;;  %v1143_v42 = vld [vmem:[%s1535_s1 + $0x20] sm:$0xff] }
 0x16c   :  { %v309_v54 = vmax.f32 %v301_v53, 0.0 }
 0x16d   :  { %822 = vmatpush.bf16.msra.mxu0 %v1151_v41 }
 0x16e   :  { %v319_v57 = vmul.f32 %v1375_v49, %v309_v54  ;;  %v1144_v49 = vld [vmem:[%s1535_s1 + $0x28] sm:$0xff] }
 0x170   :  { %v329_v58 = vadd.f32 %v1382_v55, %v319_v57  ;;  %v1145_v55 = vld [vmem:[%s1535_s1 + $0x30] sm:$0xff] }
 0x172   :  { %v333_v59 = vpack.c.bf16 %v329_v58, %v328_v35 }
 0x174   :  { %379 = vmatpush.bf16.msrb.mxu3 %v333_v59  ;;  %1044 = vmatmul.msk.bf16.gmra.mxu2 %vm451_vm3, %v333_v59 }
 0x178   :  { %380 = vmatpush.bf16.msrb.mxu3 %v332_v46 }
 0x17c   :  { %381 = vmatpush.bf16.msrb.mxu3 %v331_v23 }
 0x180   :  { %382 = vmatpush.bf16.msrb.mxu3 %v1387_v63 }
 0x183   :  { %1032 = vmatmul.msk.bf16.vlgmr.msrb.gmra.mxu3 %vm157_vm1, %v1143_v42 }
 0x193   :  { %1033 = vmatmul.msk.bf16.gmra.mxu3 %vm157_vm1, %v1144_v49 }
 0x196   :  { %v406_v0 = vpop.permute.xlu2 %405 }
 0x19e   :  { %v418_v7 = vpop.permute.xlu2 %417 }
 0x1a3   :  { %1034 = vmatmul.msk.bf16.gmra.mxu3 %vm157_vm1, %v1145_v55 }
 0x1a6   :  { %v426_v19 = vpop.permute.xlu2 %425 }
 0x1ac   :  { %v410_v1 = vpop.permute.xlu0 %409  ;;  %v414_v9 = vpop.permute.xlu1 %413 }
 0x1b3   :  { %1035 = vmatmul.msk.bf16.gmra.mxu3 %vm157_vm1, %v1146_v60 }
 0x1b4   :  { %v422_v21 = vpop.permute.xlu1 %421  ;;  %v430_v29 = vpop.permute.xlu0 %429 }
 0x1bc   :  { %v434_v30 = vpop.permute.xlu1 %433 }
 0x1c7   :  { %v521_v43 = vpop.f32.mrf.mxu2 }
 0x1cf   :  { %v523_v44 = vpop.f32.mrf.mxu2 }
 0x1d7   :  { %v526_v48 = vpop.f32.mrf.mxu2 }
 0x1df   :  { %v528_v58 = vpop.f32.mrf.mxu2 }
 0x206   :  { %v384_v63 = vpop.f32.mrf.mxu3 }
 0x207   :  { %v436_v3 = vmul.f32 %v406_v0, %v384_v63 }
 0x20e   :  { %v386_v2 = vpop.f32.mrf.mxu3 }
 0x20f   :  { %v437_v4 = vmul.f32 %v410_v1, %v386_v2  ;;  %v531_v1 = vpop.f32.mrf.mxu2 }
 0x211   :  { %v445_v5 = vpack.c.bf16 %v437_v4, %v436_v3 }
 0x213   :  { %1037 = vmatmul.msk.bf16.vlgmr.msrb.gmra.mxu0 %vm451_vm3, %v445_v5 }
 0x216   :  { %v389_v6 = vpop.f32.mrf.mxu3 }
 0x217   :  { %v438_v11 = vmul.f32 %v414_v9, %v389_v6 }
 0x21e   :  { %v391_v10 = vpop.f32.mrf.mxu3 }
 0x21f   :  { %v439_v14 = vmul.f32 %v418_v7, %v391_v10 }
 0x221   :  { %v446_v17 = vpack.c.bf16 %v439_v14, %v438_v11  ;;  %v533_v14 = vpop.f32.mrf.mxu2 }
 0x223   :  { %1038 = vmatmul.msk.bf16.gmra.mxu0 %vm451_vm3, %v446_v17 }
 0x226   :  { %v394_v18 = vpop.f32.mrf.mxu3 }
 0x227   :  { %v440_v23 = vmul.f32 %v422_v21, %v394_v18 }
 0x22e   :  { %v396_v22 = vpop.f32.mrf.mxu3 }
 0x22f   :  { %v441_v24 = vmul.f32 %v426_v19, %v396_v22 }
 0x231   :  { %v447_v25 = vpack.c.bf16 %v441_v24, %v440_v23 }
 0x233   :  { %1039 = vmatmul.msk.bf16.gmra.mxu0 %vm451_vm3, %v447_v25  ;;  %v536_v25 = vpop.f32.mrf.mxu2 }
 0x236   :  { %v399_v26 = vpop.f32.mrf.mxu3 }
 0x237   :  { %v442_v34 = vmul.f32 %v430_v29, %v399_v26 }
 0x23b   :  { %v538_v38 = vpop.f32.mrf.mxu2 }
 0x23e   :  { %v401_v33 = vpop.f32.mrf.mxu3 }
 0x23f   :  { %v443_v36 = vmul.f32 %v434_v30, %v401_v33 }
 0x241   :  { %v448_v32 = vpack.c.bf16 %v443_v36, %v442_v34 }
 0x243   :  { %1040 = vmatmul.msk.bf16.gmra.mxu0 %vm451_vm3, %v448_v32 }
 0x290   :  { %v477_v45 = vpop.f32.mrf.mxu0 }
 0x291   :  { %v522_v46 = vadd.f32 %v521_v43, %v477_v45 }
 0x293   :  { %v543_v47 = vadd.f32 %v1183_v37, %v522_v46  ;;  %v1219_v46 = vmov 2  }
 0x294   :  { %1178 = vset.pattern.permute.xlu0 %v1219_v46  ;;  %1179 = vset.pattern.permute.xlu1 %v1219_v46 }
 0x295   :  { %v551_v31 = vmax.f32 %v543_v47, 0.0  ;;  %658 = vperm.xlu0 %1178, %v1327_v20   ;;  %662 = vperm.xlu1 %1179, %v1341_v27   ;;  %v1147_v20 = vld [vmem:[%s1535_s1 + $0x40] sm:$0xff]  ;;  %v1156_v27 = vld [vmem:[#allocation2 + $0x28] sm:$0xff] }
 0x296   :  { %1177 = vset.pattern.permute.xlu2 %v1219_v46 }
 0x297   :  { %v561_v54 = vmul.f32 %v1184_v51, %v551_v31  ;;  %654 = vperm.xlu2 %1177, %v1318_v16   ;;  %v1157_v16 = vld [vmem:[#allocation2 + $0x30] sm:$0xff] }
 0x298   :  { %v479_v50 = vpop.f32.mrf.mxu0 }
 0x299   :  { %v524_v52 = vadd.f32 %v523_v44, %v479_v50  ;;  %v571_v42 = vadd.f32 %v1185_v56, %v561_v54 }
 0x29b   :  { %v544_v53 = vadd.f32 %v1183_v37, %v524_v52 }
 0x29d   :  { %v552_v57 = vmax.f32 %v544_v53, 0.0  ;;  %670 = vperm.xlu1 %1179, %v1306_v13   ;;  %678 = vperm.xlu0 %1178, %v1293_v8   ;;  %v1148_v13 = vld [vmem:[%s1535_s1 + $0x48] sm:$0xff]  ;;  %v1149_v8 = vld [vmem:[%s1535_s1 + $0x50] sm:$0xff] }
 0x29f   :  { %v562_v35 = vmul.f32 %v1184_v51, %v552_v57  ;;  %666 = vperm.xlu2 %1177, %v1347_v28   ;;  %v1155_v28 = vld [vmem:[#allocation2 + $0x20] sm:$0xff] }
 0x2a0   :  { %v482_v59 = vpop.f32.mrf.mxu0 }
 0x2a1   :  { %v572_v49 = vadd.f32 %v1185_v56, %v562_v35  ;;  %v527_v55 = vadd.f32 %v526_v48, %v482_v59 }
 0x2a3   :  { %v579_v60 = vpack.c.bf16 %v572_v49, %v571_v42  ;;  %v545_v61 = vadd.f32 %v1183_v37, %v527_v55 }
 0x2a5   :  { %1109 = vmatmul.msk.bf16.vlgmr.msra.gmra.mxu0 %vm157_vm1, %v579_v60  ;;  %v553_v63 = vmax.f32 %v545_v61, 0.0  ;;  %682 = vperm.xlu1 %1179, %v1301_v12   ;;  %v1150_v12 = vld [vmem:[%s1535_s1 + $0x58] sm:$0xff] }
 0x2a7   :  { %v563_v3 = vmul.f32 %v1184_v51, %v553_v63  ;;  %674 = vperm.xlu2 %1177, %v1313_v15   ;;  %v1158_v15 = vld [vmem:[#allocation2 + $0x38] sm:$0xff] }
 0x2a8   :  { %v484_v62 = vpop.f32.mrf.mxu0  ;;  %754 = vmatpush.bf16.msra.mxu3 %v1158_v15 }
 0x2a9   :  { %v529_v0 = vadd.f32 %v528_v58, %v484_v62  ;;  %v573_v9 = vadd.f32 %v1185_v56, %v563_v3 }
 0x2ab   :  { %v546_v2 = vadd.f32 %v1183_v37, %v529_v0 }
 0x2ac   :  { %755 = vmatpush.bf16.msra.mxu3 %v1157_v16 }
 0x2ad   :  { %v554_v4 = vmax.f32 %v546_v2, 0.0 }
 0x2af   :  { %v564_v5 = vmul.f32 %v1184_v51, %v554_v4 }
 0x2b0   :  { %v487_v6 = vpop.f32.mrf.mxu0  ;;  %756 = vmatpush.bf16.msra.mxu3 %v1156_v27 }
 0x2b1   :  { %v532_v7 = vadd.f32 %v531_v1, %v487_v6  ;;  %v574_v10 = vadd.f32 %v1185_v56, %v564_v5 }
 0x2b3   :  { %v580_v11 = vpack.c.bf16 %v574_v10, %v573_v9  ;;  %v547_v17 = vadd.f32 %v1183_v37, %v532_v7 }
 0x2b4   :  { %757 = vmatpush.bf16.msra.mxu3 %v1155_v28 }
 0x2b5   :  { %1110 = vmatmul.msk.bf16.gmra.mxu0 %vm157_vm1, %v580_v11  ;;  %v555_v19 = vmax.f32 %v547_v17, 0.0  ;;  %v1161_v17 = vld [vmem:[%s1540_s6 + $0x10] sm:$0xff] }
 0x2b7   :  { %v565_v23 = vmul.f32 %v1184_v51, %v555_v19  ;;  %v1159_v19 = vld [vmem:[%s1540_s6] sm:$0xff] }
 0x2b8   :  { %v489_v18 = vpop.f32.mrf.mxu0 }
 0x2b9   :  { %v534_v21 = vadd.f32 %v533_v14, %v489_v18  ;;  %v575_v33 = vadd.f32 %v1185_v56, %v565_v23  ;;  %v1162_v14 = vld [vmem:[%s1540_s6 + $0x18] sm:$0xff]  ;;  %v1160_v18 = vld [vmem:[%s1540_s6 + $0x8] sm:$0xff] }
 0x2ba   :  { %916 = vmatpush.bf16.msra.mxu2 %v1162_v14 }
 0x2bb   :  { %v548_v22 = vadd.f32 %v1183_v37, %v534_v21 }
 0x2bd   :  { %v556_v24 = vmax.f32 %v548_v22, 0.0 }
 0x2be   :  { %917 = vmatpush.bf16.msra.mxu2 %v1161_v17 }
 0x2bf   :  { %v566_v26 = vmul.f32 %v1184_v51, %v556_v24 }
 0x2c0   :  { %v492_v29 = vpop.f32.mrf.mxu0 }
 0x2c1   :  { %v537_v30 = vadd.f32 %v536_v25, %v492_v29  ;;  %v576_v34 = vadd.f32 %v1185_v56, %v566_v26  ;;  %v1186_v25 = vld [vmem:[%s1541_s7 + $0x6] ss:$0 sm:$0xff] }
 0x2c2   :  { %918 = vmatpush.bf16.msra.mxu2 %v1160_v18 }
 0x2c3   :  { %v581_v36 = vpack.c.bf16 %v576_v34, %v575_v33  ;;  %v549_v32 = vadd.f32 %v1183_v37, %v537_v30 }
 0x2c5   :  { %1111 = vmatmul.msk.bf16.gmra.mxu0 %vm157_vm1, %v581_v36  ;;  %v557_v40 = vmax.f32 %v549_v32, 0.0 }
 0x2c6   :  { %919 = vmatpush.bf16.msra.mxu2 %v1159_v19 }
 0x2c7   :  { %v567_v44 = vmul.f32 %v1184_v51, %v557_v40 }
 0x2c8   :  { %v494_v39 = vpop.f32.mrf.mxu0 }
 0x2c9   :  { %v539_v41 = vadd.f32 %v538_v38, %v494_v39  ;;  %v577_v48 = vadd.f32 %v1185_v56, %v567_v44 }
 0x2cb   :  { %v550_v43 = vadd.f32 %v1183_v37, %v539_v41 }
 0x2cd   :  { %v558_v45 = vmax.f32 %v550_v43, 0.0 }
 0x2cf   :  { %v568_v47 = vmul.f32 %v1184_v51, %v558_v45 }
 0x2d1   :  { %v578_v50 = vadd.f32 %v1185_v56, %v568_v47 }
 0x2d3   :  { %v582_v31 = vpack.c.bf16 %v578_v50, %v577_v48 }
 0x2d5   :  { %628 = vmatpush.bf16.msra.mxu1 %v582_v31  ;;  %1112 = vmatmul.msk.bf16.gmra.mxu0 %vm157_vm1, %v582_v31 }
 0x2d9   :  { %629 = vmatpush.bf16.msra.mxu1 %v581_v36 }
 0x2dd   :  { %630 = vmatpush.bf16.msra.mxu1 %v580_v11 }
 0x2e1   :  { %631 = vmatpush.bf16.msra.mxu1 %v579_v60 }
 0x2e4   :  { %1069 = vmatmul.msk.bf16.vlgmr.msra.gmra.mxu1 %vm157_vm1, %v1147_v20 }
 0x2f1   :  { %v655_v51 = vpop.permute.xlu2 %654 }
 0x2f4   :  { %1070 = vmatmul.msk.bf16.gmra.mxu1 %vm157_vm1, %v1148_v13 }
 0x2f9   :  { %v667_v58 = vpop.permute.xlu2 %666 }
 0x301   :  { %v675_v62 = vpop.permute.xlu2 %674 }
 0x304   :  { %1071 = vmatmul.msk.bf16.gmra.mxu1 %vm157_vm1, %v1149_v8 }
 0x307   :  { %v659_v52 = vpop.permute.xlu0 %658  ;;  %v663_v59 = vpop.permute.xlu1 %662 }
 0x30f   :  { %v671_v63 = vpop.permute.xlu1 %670  ;;  %v679_v5 = vpop.permute.xlu0 %678 }
 0x314   :  { %1072 = vmatmul.msk.bf16.gmra.mxu1 %vm157_vm1, %v1150_v12 }
 0x317   :  { %v683_v6 = vpop.permute.xlu1 %682 }
 0x322   :  { %v824_v21 = vpop.f32.mrf.mxu0 }
 0x32a   :  { %v826_v22 = vpop.f32.mrf.mxu0 }
 0x332   :  { %v829_v26 = vpop.f32.mrf.mxu0 }
 0x33a   :  { %v831_v39 = vpop.f32.mrf.mxu0 }
 0x342   :  { %v834_v46 = vpop.f32.mrf.mxu0 }
 0x34a   :  { %v836_v13 = vpop.f32.mrf.mxu0 }
 0x361   :  { %v633_v37 = vpop.f32.mrf.mxu1 }
 0x362   :  { %v685_v54 = vmul.f32 %v655_v51, %v633_v37  ;;  %v839_v51 = vpop.f32.mrf.mxu0 }
 0x369   :  { %v635_v53 = vpop.f32.mrf.mxu1 }
 0x36a   :  { %v686_v56 = vmul.f32 %v659_v52, %v635_v53 }
 0x36c   :  { %v701_v57 = vpack.c.bf16 %v686_v56, %v685_v54  ;;  %v841_v56 = vpop.f32.mrf.mxu0 }
 0x36e   :  { %1089 = vmatmul.msk.bf16.vlgmr.msra.gmra.mxu3 %vm157_vm1, %v701_v57 }
 0x371   :  { %v638_v35 = vpop.f32.mrf.mxu1 }
 0x372   :  { %v687_v49 = vmul.f32 %v663_v59, %v638_v35 }
 0x379   :  { %v640_v42 = vpop.f32.mrf.mxu1 }
 0x37a   :  { %v688_v55 = vmul.f32 %v667_v58, %v640_v42 }
 0x37c   :  { %v702_v60 = vpack.c.bf16 %v688_v55, %v687_v49 }
 0x37e   :  { %1090 = vmatmul.msk.bf16.gmra.mxu3 %vm157_vm1, %v702_v60  ;;  %v1187_v60 = vld [vmem:[%s1541_s7 + $0x7] ss:$0 sm:$0xff] }
 0x381   :  { %v643_v61 = vpop.f32.mrf.mxu1 }
 0x382   :  { %v689_v1 = vmul.f32 %v671_v63, %v643_v61 }
 0x389   :  { %v645_v0 = vpop.f32.mrf.mxu1 }
 0x38a   :  { %v690_v2 = vmul.f32 %v675_v62, %v645_v0 }
 0x38c   :  { %v703_v3 = vpack.c.bf16 %v690_v2, %v689_v1 }
 0x38e   :  { %1091 = vmatmul.msk.bf16.gmra.mxu3 %vm157_vm1, %v703_v3 }
 0x391   :  { %v648_v4 = vpop.f32.mrf.mxu1 }
 0x392   :  { %v691_v9 = vmul.f32 %v679_v5, %v648_v4 }
 0x399   :  { %v650_v7 = vpop.f32.mrf.mxu1 }
 0x39a   :  { %v692_v10 = vmul.f32 %v683_v6, %v650_v7 }
 0x39c   :  { %v704_v11 = vpack.c.bf16 %v692_v10, %v691_v9 }
 0x39e   :  { %1092 = vmatmul.msk.bf16.gmra.mxu3 %vm157_vm1, %v704_v11 }
 0x3f1   :  { %v759_v23 = vpop.f32.mrf.mxu3 }
 0x3f2   :  { %v825_v24 = vadd.f32 %v824_v21, %v759_v23 }
 0x3f4   :  { %v846_v30 = vadd.f32 %v1186_v25, %v825_v24 }
 0x3f6   :  { %v854_v36 = vmax.f32 %v846_v30, 0.0 }
 0x3f9   :  { %v761_v29 = vpop.f32.mrf.mxu3 }
 0x3fa   :  { %v827_v33 = vadd.f32 %v826_v22, %v761_v29 }
 0x3fc   :  { %v847_v34 = vadd.f32 %v1186_v25, %v827_v33 }
 0x3fe   :  { %v855_v32 = vmax.f32 %v847_v34, 0.0 }
 0x400   :  { %v862_v38 = vpack.c.bf16 %v855_v32, %v854_v36 }
 0x401   :  { %v764_v40 = vpop.f32.mrf.mxu3 }
 0x402   :  { %1129 = vmatmul.msk.bf16.vlgmr.msra.gmra.mxu2 %vm157_vm1, %v862_v38  ;;  %v830_v41 = vadd.f32 %v829_v26, %v764_v40 }
 0x404   :  { %v848_v44 = vadd.f32 %v1186_v25, %v830_v41 }
 0x406   :  { %v856_v48 = vmax.f32 %v848_v44, 0.0 }
 0x409   :  { %v766_v43 = vpop.f32.mrf.mxu3 }
 0x40a   :  { %v832_v45 = vadd.f32 %v831_v39, %v766_v43 }
 0x40c   :  { %v849_v47 = vadd.f32 %v1186_v25, %v832_v45 }
 0x40e   :  { %v857_v50 = vmax.f32 %v849_v47, 0.0 }
 0x410   :  { %v863_v31 = vpack.c.bf16 %v857_v50, %v856_v48 }
 0x411   :  { %v769_v20 = vpop.f32.mrf.mxu3 }
 0x412   :  { %1130 = vmatmul.msk.bf16.gmra.mxu2 %vm157_vm1, %v863_v31  ;;  %v835_v8 = vadd.f32 %v834_v46, %v769_v20 }
 0x414   :  { %v850_v15 = vadd.f32 %v1186_v25, %v835_v8 }
 0x416   :  { %v858_v28 = vmax.f32 %v850_v15, 0.0 }
 0x419   :  { %v771_v12 = vpop.f32.mrf.mxu3 }
 0x41a   :  { %v837_v16 = vadd.f32 %v836_v13, %v771_v12 }
 0x41c   :  { %v851_v27 = vadd.f32 %v1186_v25, %v837_v16 }
 0x41e   :  { %v859_v37 = vmax.f32 %v851_v27, 0.0 }
 0x420   :  { %v864_v52 = vpack.c.bf16 %v859_v37, %v858_v28 }
 0x421   :  { %v774_v53 = vpop.f32.mrf.mxu3 }
 0x422   :  { %1131 = vmatmul.msk.bf16.gmra.mxu2 %vm157_vm1, %v864_v52  ;;  %v840_v54 = vadd.f32 %v839_v51, %v774_v53 }
 0x424   :  { %v852_v35 = vadd.f32 %v1186_v25, %v840_v54 }
 0x426   :  { %v860_v42 = vmax.f32 %v852_v35, 0.0 }
 0x429   :  { %v776_v57 = vpop.f32.mrf.mxu3 }
 0x42a   :  { %v842_v58 = vadd.f32 %v841_v56, %v776_v57 }
 0x42c   :  { %v853_v59 = vadd.f32 %v1186_v25, %v842_v58 }
 0x42e   :  { %v861_v49 = vmax.f32 %v853_v59, 0.0 }
 0x430   :  { %v865_v55 = vpack.c.bf16 %v861_v49, %v860_v42 }
 0x432   :  { %1132 = vmatmul.msk.bf16.gmra.mxu2 %vm157_vm1, %v865_v55 }
 0x485   :  { %v921_v61 = vpop.f32.mrf.mxu2 }
 0x486   :  { %v922_v62 = vadd.f32 %v1187_v60, %v921_v61 }
 0x488   :  { %941 = vst [vmem:[%s1542_s8] sm:$0xff] %v922_v62 }
 0x48d   :  { %v923_v63 = vpop.f32.mrf.mxu2 }
 0x48e   :  { %v924_v0 = vadd.f32 %v1187_v60, %v923_v63 }
 0x490   :  { %942 = vst [vmem:[%s1542_s8 + $0x8] sm:$0xff] %v924_v0 }
 0x495   :  { %v926_v1 = vpop.f32.mrf.mxu2 }
 0x496   :  { %v927_v2 = vadd.f32 %v1187_v60, %v926_v1 }
 0x498   :  { %943 = vst [vmem:[%s1542_s8 + $0x10] sm:$0xff] %v927_v2 }
 0x49d   :  { %v928_v3 = vpop.f32.mrf.mxu2 }
 0x49e   :  { %v929_v4 = vadd.f32 %v1187_v60, %v928_v3 }
 0x4a0   :  { %944 = vst [vmem:[%s1542_s8 + $0x18] sm:$0xff] %v929_v4 }
 0x4a5   :  { %v931_v5 = vpop.f32.mrf.mxu2 }
 0x4a6   :  { %v932_v6 = vadd.f32 %v1187_v60, %v931_v5 }
 0x4a8   :  { %945 = vst [vmem:[%s1542_s8 + $0x20] sm:$0xff] %v932_v6 }
 0x4ad   :  { %v933_v7 = vpop.f32.mrf.mxu2 }
 0x4ae   :  { %v934_v9 = vadd.f32 %v1187_v60, %v933_v7 }
 0x4b0   :  { %946 = vst [vmem:[%s1542_s8 + $0x28] sm:$0xff] %v934_v9 }
 0x4b5   :  { %v936_v10 = vpop.f32.mrf.mxu2 }
 0x4b6   :  { %v937_v11 = vadd.f32 %v1187_v60, %v936_v10 }
 0x4b8   :  { %947 = vst [vmem:[%s1542_s8 + $0x30] sm:$0xff] %v937_v11 }
 0x4bd   :  { %v938_v14 = vpop.f32.mrf.mxu2 }
 0x4be   :  { %v939_v17 = vadd.f32 %v1187_v60, %v938_v14 }
 0x4c0   :  { %948 = vst [vmem:[%s1542_s8 + $0x38] sm:$0xff] %v939_v17 }
 0x4c1   :  { %953 = vsyncpa [#allocation3], 1 }

</bundles_post_ra>
